<compile_context>
chip_gen: v7x
topology: tpu7x:2x2x1
jax: 0.10.0
libtpu: 0.0.40
codegen_flags: <defaults>
</compile_context>

<pallas_src>
import jax
import jax.numpy as jnp
from jax.experimental import pallas as pl
from jax.experimental.pallas import tpu as pltpu

D_IN = 28 * 28   # 784
D_HID = 256
D_OUT = 10

_LANE = 128
_D_IN_PAD = ((D_IN + _LANE - 1) // _LANE) * _LANE    # 896 lanes in VMEM
_D_OUT_PAD = _LANE                                   # 10 -> 128 lanes in VMEM


def _mlp_kernel(x_ref, w1_ref, b1_ref, w2_ref, b2_ref, o_ref):
    # x_ref:  (TB, 784)  f32    (streamed per grid step)
    # w1_ref: (784, 256) bf16   (resident)
    # b1_ref: (1, 256)   f32    (resident)
    # w2_ref: (256, 10)  f32    (resident)
    # b2_ref: (1, 10)    f32    (resident)
    # o_ref:  (TB, 10)   f32
    #
    # Cast x to bf16 in-kernel (cheap VPU pass, hidden under the DMA) so the
    # dominant HBM stream stays f32-from-the-caller with no wrapper copy.
    x = x_ref[...].astype(jnp.bfloat16)

    # Linear(784 -> 256): bf16 operands on the MXU, f32 accumulation.
    h = jnp.dot(x, w1_ref[...], preferred_element_type=jnp.float32) + b1_ref[...]
    # ReLU in f32 on the VPU.
    h = jnp.maximum(h, 0.0)

    # Linear(256 -> 10): tiny matmul, keep it entirely in f32.
    logits = jnp.dot(h, w2_ref[...], preferred_element_type=jnp.float32) + b2_ref[...]

    # Numerically-stable softmax over dim=1 (all f32 elementwise).
    m = jnp.max(logits, axis=-1, keepdims=True)
    e = jnp.exp(logits - m)
    inv = pl.reciprocal(jnp.sum(e, axis=-1, keepdims=True), approx=False)
    o_ref[...] = (e * inv).astype(o_ref.dtype)


def _pick_batch_tile(B, block_b):
    """Pick (tb, b_pad).

    Preferences: no padding copy of x (tb divides B), MXU-aligned tiles
    (multiple of 256), >= 2 grid steps for v7x megacore sharding, tb <= block_b
    (conservative for v7x's 64 MiB VMEM / 32 MiB scoped default).
    """
    ALIGN = 256
    cap = max(ALIGN, (block_b // ALIGN) * ALIGN)
    if B < 2 * ALIGN:
        # Single full-array tile: block_shape == array shape, so no (8,128)
        # divisibility constraint and no padding.
        return B, B
    # Largest 256-aligned tb <= cap giving >= 2 grid steps and dividing B.
    tb = min(cap, (B // 2 // ALIGN) * ALIGN)
    while tb >= ALIGN:
        if B % tb == 0:
            return tb, B
        tb -= ALIGN
    # No exact divisor: fall back to a padded last tile (rare; costs one
    # jnp.pad copy of x).  Keep >= 2 grid steps.
    tb = min(cap, ((pl.cdiv(B, 2) + ALIGN - 1) // ALIGN) * ALIGN)
    b_pad = pl.cdiv(B, tb) * tb
    return tb, b_pad


def feed_forward_net(x_nchw, w1, b1, w2, b2, *, block_b=2048):
    """Forward pass of FeedForwardNet.

    Args:
      x_nchw: (B, 1, 28, 28) float32, NCHW like PyTorch.
      w1: (784, 256), b1: (256,), w2: (256, 10), b2: (10,)
        (weights stored transposed vs. PyTorch so the kernel does x @ W + b)
      block_b: batch tile cap (multiple of 256; 2048 is safe on v5e/v6e/v7x).
    Returns:
      (B, 10) softmax probabilities, float32.
    """
    B = x_nchw.shape[0]
    # nn.Flatten (row-major, identical to PyTorch).  This reshape is a free
    # layout/metadata op; x stays f32 and is cast to bf16 inside the kernel.
    x = x_nchw.reshape(B, -1)
    assert x.shape[1] == D_IN

    tb, b_pad = _pick_batch_tile(B, block_b)
    num_tiles = pl.cdiv(b_pad, tb)
    if b_pad != B:
        # TODO(synk): replace with a masked ragged last tile to avoid this copy.
        x = jnp.pad(x, ((0, b_pad - B), (0, 0)))

    # Weights: w1 bf16 (MXU-native, dominant matmul), w2/biases f32 (tiny).
    w1_bf = w1.astype(jnp.bfloat16)
    w2_f32 = w2.astype(jnp.float32)
    b1_2d = b1.reshape(1, D_HID).astype(jnp.float32)
    b2_2d = b2.reshape(1, D_OUT).astype(jnp.float32)

    # VMEM budget with lane-padded widths (784 -> 896, 10 -> 128 lanes):
    #   resident weights + double-buffered x/out tiles + in-kernel bf16 copy of
    #   x + f32 hidden, plus headroom.
    weight_bytes = (
        D_IN * D_HID * 2          # w1 bf16
        + D_HID * _D_OUT_PAD * 4  # w2 f32 (lane-padded)
        + D_HID * 4 + _D_OUT_PAD * 4
    )
    x_tile_bytes = tb * _D_IN_PAD * 4        # streamed f32
    x_bf16_bytes = tb * _D_IN_PAD * 2        # in-kernel cast copy
    out_tile_bytes = tb * _D_OUT_PAD * 4
    hid_bytes = tb * D_HID * 4
    vmem_limit = int(
        weight_bytes
        + 2 * (x_tile_bytes + out_tile_bytes)   # double-buffered streams
        + x_bf16_bytes + 2 * hid_bytes
        + (8 << 20)                             # headroom
    )
    vmem_limit = min(vmem_limit, 100 << 20)

    cost = pl.CostEstimate(
        flops=2 * b_pad * (D_IN * D_HID + D_HID * D_OUT),
        transcendentals=b_pad * (D_OUT + 1),
        bytes_accessed=b_pad * D_IN * 4 + weight_bytes + b_pad * D_OUT * 4,
    )

    out = pl.pallas_call(
        _mlp_kernel,
        out_shape=jax.ShapeDtypeStruct((b_pad, D_OUT), jnp.float32),
        grid=(num_tiles,),
        in_specs=[
            pl.BlockSpec((tb, D_IN), lambda i: (i, 0)),       # x: streamed f32
            pl.BlockSpec((D_IN, D_HID), lambda i: (0, 0)),    # w1: resident bf16
            pl.BlockSpec((1, D_HID), lambda i: (0, 0)),       # b1: resident
            pl.BlockSpec((D_HID, D_OUT), lambda i: (0, 0)),   # w2: resident f32
            pl.BlockSpec((1, D_OUT), lambda i: (0, 0)),       # b2: resident
        ],
        out_specs=pl.BlockSpec((tb, D_OUT), lambda i: (i, 0)),
        compiler_params=pltpu.CompilerParams(
            dimension_semantics=("parallel",),   # megacore sharding on v7x
            vmem_limit_bytes=vmem_limit,
        ),
        cost_estimate=cost,
    )(x, w1_bf, b1_2d, w2_f32, b2_2d)

    return out[:B] if b_pad != B else out


def init_params(key):
    """Deterministic init matching nn.Linear default (uniform +/- 1/sqrt(fan_in))."""
    k1, k2, k3, k4 = jax.random.split(key, 4)
    fan1 = D_IN
    fan2 = D_HID
    lim1 = 1.0 / jnp.sqrt(fan1)
    lim2 = 1.0 / jnp.sqrt(fan2)
    w1 = jax.random.uniform(k1, (fan1, D_HID), jnp.float32, -lim1, lim1)
    b1 = jax.random.uniform(k2, (fan1,), jnp.float32, -lim1, lim1)[:D_HID]
    b1 = jax.random.uniform(k2, (D_HID,), jnp.float32, -lim1, lim1)
    w2 = jax.random.uniform(k3, (fan2, D_OUT), jnp.float32, -lim2, lim2)
    b2 = jax.random.uniform(k4, (D_OUT,), jnp.float32, -lim2, lim2)
    return w1, b1, w2, b2


if __name__ == "__main__":
    key = jax.random.PRNGKey(0)
    k_x, k_p = jax.random.split(key)

    # Small batch of MNIST-shaped inputs, NCHW like the PyTorch module expects.
    x = jax.random.normal(k_x, (2, 1, 28, 28), jnp.float32)
    w1, b1, w2, b2 = init_params(k_p)

    probs = feed_forward_net(x, w1, b1, w2, b2)
    probs = jax.block_until_ready(probs)

    # Sanity check against a pure-f32 JAX reference of the same math.
    # (Only x/w1 are bf16 on the MXU now => tight tolerance vs. f32 reference.)
    x_flat = x.reshape(x.shape[0], -1)
    h_ref = jnp.maximum(x_flat @ w1 + b1, 0.0)
    logits_ref = h_ref @ w2 + b2
    ref = jax.nn.softmax(logits_ref, axis=1)
    assert probs.shape == (2, 10)
    assert jnp.allclose(probs, ref, atol=2e-2, rtol=2e-2)
    # Rows sum to 1 (exact reciprocal now).
    assert jnp.allclose(jnp.sum(probs, axis=1), 1.0, atol=1e-5)

    print("KERNEL_OK")
</pallas_src>

<mosaic_0001>
module attributes {stable_mosaic.version = 11 : i64} {
  func.func @_mlp_kernel(%arg0: i32, %arg1: memref<2x784xf32, #tpu.memory_space<vmem>>, %arg2: memref<784x256xbf16, #tpu.memory_space<vmem>>, %arg3: memref<1x256xf32, #tpu.memory_space<vmem>>, %arg4: memref<256x10xf32, #tpu.memory_space<vmem>>, %arg5: memref<1x10xf32, #tpu.memory_space<vmem>>, %arg6: memref<2x10xf32, #tpu.memory_space<vmem>>) attributes {dimension_semantics = [#tpu.dimension_semantics<parallel>], iteration_bounds = array<i64: 1>, scalar_prefetch = 0 : i64, scratch_operands = 0 : i64, tpu.core_type = #tpu.core_type<tc>, window_params = [{transform_indices = @transform_0, window_bounds = array<i64: 2, 784>}, {pipeline_mode = #tpu.pipeline_mode<synchronous>, transform_indices = @transform_1, window_bounds = array<i64: 784, 256>}, {pipeline_mode = #tpu.pipeline_mode<synchronous>, transform_indices = @transform_2, window_bounds = array<i64: 1, 256>}, {pipeline_mode = #tpu.pipeline_mode<synchronous>, transform_indices = @transform_3, window_bounds = array<i64: 256, 10>}, {pipeline_mode = #tpu.pipeline_mode<synchronous>, transform_indices = @transform_4, window_bounds = array<i64: 1, 10>}, {transform_indices = @transform_5, window_bounds = array<i64: 2, 10>}]} {
    %c0 = arith.constant 0 : index
    %c0_0 = arith.constant 0 : index
    %0 = vector.load %arg1[%c0, %c0_0] : memref<2x784xf32, #tpu.memory_space<vmem>>, vector<2x784xf32>
    %1 = arith.truncf %0 : vector<2x784xf32> to vector<2x784xbf16>
    %c0_1 = arith.constant 0 : index
    %c0_2 = arith.constant 0 : index
    %2 = vector.load %arg2[%c0_1, %c0_2] : memref<784x256xbf16, #tpu.memory_space<vmem>>, vector<784x256xbf16>
    %cst = arith.constant dense<0.000000e+00> : vector<2x256xf32>
    %3 = tpu.matmul %1, %2, %cst {dimension_numbers = #tpu.dot_dimension_numbers<[1], [0], [0], [1], [0, 0, 1, 1], [], []>} : vector<2x784xbf16>, vector<784x256xbf16>, vector<2x256xf32> -> vector<2x256xf32>
    %c0_3 = arith.constant 0 : index
    %c0_4 = arith.constant 0 : index
    %4 = vector.load %arg3[%c0_3, %c0_4] : memref<1x256xf32, #tpu.memory_space<vmem>>, vector<1x256xf32>
    %5 = vector.broadcast %4 : vector<1x256xf32> to vector<2x256xf32>
    %6 = arith.addf %3, %5 : vector<2x256xf32>
    %cst_5 = arith.constant 0.000000e+00 : f32
    %7 = vector.broadcast %cst_5 : f32 to vector<2x256xf32>
    %8 = arith.maximumf %6, %7 : vector<2x256xf32>
    %c0_6 = arith.constant 0 : index
    %c0_7 = arith.constant 0 : index
    %9 = vector.load %arg4[%c0_6, %c0_7] : memref<256x10xf32, #tpu.memory_space<vmem>>, vector<256x10xf32>
    %cst_8 = arith.constant dense<0.000000e+00> : vector<2x10xf32>
    %10 = tpu.matmul %8, %9, %cst_8 {dimension_numbers = #tpu.dot_dimension_numbers<[1], [0], [0], [1], [0, 0, 1, 1], [], []>} : vector<2x256xf32>, vector<256x10xf32>, vector<2x10xf32> -> vector<2x10xf32>
    %c0_9 = arith.constant 0 : index
    %c0_10 = arith.constant 0 : index
    %11 = vector.load %arg5[%c0_9, %c0_10] : memref<1x10xf32, #tpu.memory_space<vmem>>, vector<1x10xf32>
    %12 = vector.broadcast %11 : vector<1x10xf32> to vector<2x10xf32>
    %13 = arith.addf %10, %12 : vector<2x10xf32>
    %cst_11 = arith.constant dense<0xFF800000> : vector<2xf32>
    %14 = vector.multi_reduction <maximumf>, %13, %cst_11 [1] : vector<2x10xf32> to vector<2xf32>
    %15 = vector.shape_cast %14 : vector<2xf32> to vector<2x1xf32>
    %16 = vector.broadcast %15 : vector<2x1xf32> to vector<2x10xf32>
    %17 = arith.subf %13, %16 : vector<2x10xf32>
    %18 = math.exp %17 : vector<2x10xf32>
    %cst_12 = arith.constant dense<0.000000e+00> : vector<2xf32>
    %19 = vector.multi_reduction <add>, %18, %cst_12 [1] : vector<2x10xf32> to vector<2xf32>
    %20 = vector.shape_cast %19 : vector<2xf32> to vector<2x1xf32>
    %21 = tpu.reciprocal %20 : vector<2x1xf32> -> vector<2x1xf32>
    %22 = vector.broadcast %21 : vector<2x1xf32> to vector<2x10xf32>
    %23 = arith.mulf %18, %22 : vector<2x10xf32>
    %c0_13 = arith.constant 0 : index
    %c0_14 = arith.constant 0 : index
    %24 = vector.load %arg6[%c0_13, %c0_14] : memref<2x10xf32, #tpu.memory_space<vmem>>, vector<2x10xf32>
    tpu.vector_store %arg6[%c0_13, %c0_14], %23 {strides = array<i32>} : memref<2x10xf32, #tpu.memory_space<vmem>>, vector<2x10xf32>,
    return
  }
  func.func @transform_0(%arg0: i32) -> (i32, i32) {
    %c0_i32 = arith.constant 0 : i32
    %c0_i32_0 = arith.constant 0 : i32
    return %arg0, %c0_i32 : i32, i32
  }
  func.func @transform_1(%arg0: i32) -> (i32, i32) {
    %c0_i32 = arith.constant 0 : i32
    %c0_i32_0 = arith.constant 0 : i32
    %c0_i32_1 = arith.constant 0 : i32
    return %c0_i32, %c0_i32_0 : i32, i32
  }
  func.func @transform_2(%arg0: i32) -> (i32, i32) {
    %c0_i32 = arith.constant 0 : i32
    %c0_i32_0 = arith.constant 0 : i32
    %c0_i32_1 = arith.constant 0 : i32
    return %c0_i32, %c0_i32_0 : i32, i32
  }
  func.func @transform_3(%arg0: i32) -> (i32, i32) {
    %c0_i32 = arith.constant 0 : i32
    %c0_i32_0 = arith.constant 0 : i32
    %c0_i32_1 = arith.constant 0 : i32
    return %c0_i32, %c0_i32_0 : i32, i32
  }
  func.func @transform_4(%arg0: i32) -> (i32, i32) {
    %c0_i32 = arith.constant 0 : i32
    %c0_i32_0 = arith.constant 0 : i32
    %c0_i32_1 = arith.constant 0 : i32
    return %c0_i32, %c0_i32_0 : i32, i32
  }
  func.func @transform_5(%arg0: i32) -> (i32, i32) {
    %c0_i32 = arith.constant 0 : i32
    %c0_i32_0 = arith.constant 0 : i32
    return %arg0, %c0_i32 : i32, i32
  }
}

</mosaic_0001>

<bundles_post_ra>
// kernel: tpu_custom_call.1
= control target key start
LH: loop header
LB: loop body
LE: loop exit
PB: predicated region body
PF: predicated region fallthrough
CT: control target
= control target key end

     0   :  { %10 = vsyncpa [#allocation3], 0  ;;  %s1578_s0 = inlined_call_operand.vmem [shape: f32[2,784], index: 0, kind: input, shape index: {}]   ;;  %s1579_s1 = inlined_call_operand.hbm [shape: bf16[784,256], index: 1, kind: input, shape index: {}]   ;;  %s1580_s2 = inlined_call_operand.vmem [shape: f32[1,256], index: 2, kind: input, shape index: {}]   ;;  %s1581_s3 = inlined_call_operand.vmem [shape: f32[256,10], index: 3, kind: input, shape index: {}]   ;;  %s1582_s4 = inlined_call_operand.vmem [shape: f32[1,10], index: 4, kind: input, shape index: {}]   ;;  %s1583_s5 = inlined_call_operand.hbm [shape: f32[2,10], index: 5, kind: output, shape index: {}]  }
   0x1   :  { %11 = vsyncpa [#allocation4], 0  ;;  %s1378_s18 = smov [#allocation2]   ;;  %s1330_s22 = scalar_lea.hbm %s1579_s1, 12544 }
   0x2   :  { %s19_s19 = sshll.u32 %s1378_s18, 4  ;;  %p1331_p0 = scmp.ne.s32.totalorder %s1579_s1, %s1330_s22  ;;  %s20_s19 = int_to_ptr.vmem [resolvable:$true] %s19_s19 }
   0x3   :  { %p1334_p1 = scmp.lt.u32.totalorder %s1330_s22, %s1579_s1 }
   0x5   :  { %p1336_p2 = pnand %p1334_p1, %p1331_p0 }
   0x7   :  { %1339 = shalt.err (!%p1336_p2)
}
   0x8   :  { %s1340_s27 = scalar_lea.vmem %s20_s19, 12544  ;;  %p1345_p4 = scmp.lt.s32.totalorder %s20_s19, %s20_s19 }
   0x9   :  { %p1341_p3 = scmp.ne.s32.totalorder %s20_s19, %s1340_s27  ;;  %p1346_p5 = scmp.lt.s32.totalorder %s1340_s27, %s1340_s27 }
   0xb   :  { %p1347_p6 = por %p1346_p5, %p1345_p4 }
   0xd   :  { %p1348_p7 = pnand %p1347_p6, %p1341_p3 }
   0xf   :  { %1351 = shalt.err (!%p1348_p7)
}
  0x10   :  { %s1379_s28 = smov 128   ;;  %s1380_s29 = smov 8  }
  0x11   :  { %25 = dma.hbm_to_vmem [thread:$0]  %s1579_s1, 12544, %s20_s19, [#allocation3], %s1379_s28, %s1379_s28, %s1380_s29  }
  0x12   :  { %1374 = dma.done.wait [#allocation3], 12544  }
  0x13   :  { %1375 = vsyncadd [#allocation3], 4294954752  ;;  %v1177_v0 = vld [vmem:[#allocation2 + $0x104] ss:$8 sps:$4 sm:$0xff]   ;;  %v1179_v1 = vld [vmem:[#allocation2 + $0x100] ss:$8 sps:$4 sm:$0xff]   ;;  %v44_v13 = vlaneseq }
  0x14   :  { %732 = vmatprep.subr.bf16.mxu0 %v1177_v0  ;;  %v1180_v2 = vld [vmem:[#allocation2 + $0x114] ss:$8 sps:$4 sm:$0xff]   ;;  %v1182_v3 = vld [vmem:[#allocation2 + $0x110] ss:$8 sps:$4 sm:$0xff]   ;;  %v1183_v4 = vld [vmem:[#allocation2 + $0x124] ss:$8 sps:$4 sm:$0xff]  }
  0x15   :  { %733 = vmatpush1.bf16.msra.mxu0 %v1179_v1  ;;  %v1185_v5 = vld [vmem:[#allocation2 + $0x120] ss:$8 sps:$4 sm:$0xff]   ;;  %v1186_v6 = vld [vmem:[#allocation2 + $0x134] ss:$8 sps:$4 sm:$0xff]   ;;  %v1188_v7 = vld [vmem:[#allocation2 + $0x130] ss:$8 sps:$4 sm:$0xff]  }
  0x16   :  { %734 = vmatprep.subr.bf16.mxu0 %v1180_v2  ;;  %v1189_v8 = vld [vmem:[#allocation2 + $0x144] ss:$8 sps:$4 sm:$0xff]   ;;  %v1191_v9 = vld [vmem:[#allocation2 + $0x140] ss:$8 sps:$4 sm:$0xff]   ;;  %v1192_v10 = vld [vmem:[#allocation2 + $0x154] ss:$8 sps:$4 sm:$0xff]  }
  0x17   :  { %v1381_v11 = vmov 1983009808   ;;  %v1194_v14 = vld [vmem:[#allocation2 + $0x150] ss:$8 sps:$4 sm:$0xff]   ;;  %v1219_v15 = vld [vmem:[#allocation2 + $0x4] ss:$8 sps:$4 sm:$0xff]  }
  0x18   :  { %v42_v12 = vunpack.c.l.s4 %v1381_v11  ;;  %v1221_v16 = vld [vmem:[#allocation2] ss:$8 sps:$4 sm:$0xff]   ;;  %v1195_v17 = vld [vmem:[#allocation2 + $0x164] ss:$8 sps:$4 sm:$0xff]   ;;  %v1426_v19 = vshrl.u32 %v44_v13, 7  ;;  %691 = vmatprep.subr.bf16.mxu1 %v1219_v15  ;;  %vm687_vm0 = vcmask 130048  }
  0x19   :  { %735 = vmatpush1.bf16.msra.mxu0 %v1182_v3  ;;  %692 = vmatpush1.bf16.msra.mxu1 %v1221_v16  ;;  %v1225_v20 = vld [vmem:[#allocation2 + $0x14] ss:$8 sps:$4 sm:$0xff]   ;;  %v1227_v21 = vld [vmem:[#allocation2 + $0x10] ss:$8 sps:$4 sm:$0xff]   ;;  %v1197_v22 = vld [vmem:[#allocation2 + $0x160] ss:$8 sps:$4 sm:$0xff]  }
  0x1a   :  { %736 = vmatprep.subr.bf16.mxu0 %v1183_v4  ;;  %v43_v18 = vunpack.c.0.s8 %v42_v12  ;;  %v1198_v23 = vld [vmem:[#allocation2 + $0x174] ss:$8 sps:$4 sm:$0xff]   ;;  %693 = vmatprep.subr.bf16.mxu1 %v1225_v20  ;;  %v1231_v24 = vld [vmem:[#allocation2 + $0x24] ss:$8 sps:$4 sm:$0xff]   ;;  %v1200_v27 = vld [vmem:[#allocation2 + $0x170] ss:$8 sps:$4 sm:$0xff]  }
  0x1b   :  { %v36_v26 = vld [vmem:[%s1578_s0] sm:$0xff]  ;;  %v1238_v31 = vld [vmem:[#allocation2 + $0x34] ss:$8 sps:$4 sm:$0xff]   ;;  %v1240_v37 = vld [vmem:[#allocation2 + $0x30] ss:$8 sps:$4 sm:$0xff]   ;;  %vm966_vm1 = vcmask 74752  }
  0x1c   :  { %v1429_v25 = vsub.s32 %v43_v18, %v1426_v19  ;;  %v1233_v28 = vld [vmem:[#allocation2 + $0x20] ss:$8 sps:$4 sm:$0xff]   ;;  %v40_v29 = vcombine.high %v36_v26, %v36_v26  ;;  %v1201_v32 = vld [vmem:[#allocation2 + $0x184] ss:$8 sps:$4 sm:$0xff]   ;;  %v1204_v40 = vld [vmem:[#allocation2 + $0x194] ss:$8 sps:$4 sm:$0xff]  }
  0x1d   :  { %737 = vmatpush1.bf16.msra.mxu0 %v1185_v5  ;;  %694 = vmatpush1.bf16.msra.mxu1 %v1227_v21  ;;  %v1203_v35 = vld [vmem:[#allocation2 + $0x180] ss:$8 sps:$4 sm:$0xff]   ;;  %v1244_v39 = vld [vmem:[#allocation2 + $0x44] ss:$8 sps:$4 sm:$0xff]   ;;  %v1206_v42 = vld [vmem:[#allocation2 + $0x190] ss:$8 sps:$4 sm:$0xff]  }
  0x1e   :  { %738 = vmatprep.subr.bf16.mxu0 %v1186_v6  ;;  %v1435_v30 = vrot.slane %v36_v26, %v1429_v25  ;;  %695 = vmatprep.subr.bf16.mxu1 %v1231_v24  ;;  %v1438_v33 = vrot.slane %v40_v29, %v1429_v25  ;;  %v1246_v43 = vld [vmem:[#allocation2 + $0x40] ss:$8 sps:$4 sm:$0xff]   ;;  %v1250_v44 = vld [vmem:[#allocation2 + $0x54] ss:$8 sps:$4 sm:$0xff]   ;;  %v1207_v45 = vld [vmem:[#allocation2 + $0x1a4] ss:$8 sps:$4 sm:$0xff]  }
  0x1f   :  { %v1209_v46 = vld [vmem:[#allocation2 + $0x1a0] ss:$8 sps:$4 sm:$0xff]   ;;  %v1252_v47 = vld [vmem:[#allocation2 + $0x50] ss:$8 sps:$4 sm:$0xff]   ;;  %v1256_v48 = vld [vmem:[#allocation2 + $0x64] ss:$8 sps:$4 sm:$0xff]  }
  0x20   :  { %v55_v34 = vcombine.high %v1435_v30, %v1435_v30  ;;  %v56_v36 = vcombine.high %v1438_v33, %v1438_v33  ;;  %v1210_v49 = vld [vmem:[#allocation2 + $0x1b4] ss:$8 sps:$4 sm:$0xff]   ;;  %v1212_v50 = vld [vmem:[#allocation2 + $0x1b0] ss:$8 sps:$4 sm:$0xff]   ;;  %v1258_v51 = vld [vmem:[#allocation2 + $0x60] ss:$8 sps:$4 sm:$0xff]  }
  0x21   :  { %739 = vmatpush1.bf16.msra.mxu0 %v1188_v7  ;;  %696 = vmatpush1.bf16.msra.mxu1 %v1233_v28  ;;  %v1262_v52 = vld [vmem:[#allocation2 + $0x74] ss:$8 sps:$4 sm:$0xff]   ;;  %v1213_v53 = vld [vmem:[#allocation2 + $0x1c4] ss:$8 sps:$4 sm:$0xff]   ;;  %v1215_v54 = vld [vmem:[#allocation2 + $0x1c0] ss:$8 sps:$4 sm:$0xff]   ;;  %v82_v7 = vpack.c.bf16 %v1438_v33, %v1438_v33 }
  0x22   :  { %740 = vmatprep.subr.bf16.mxu0 %v1189_v8  ;;  %v81_v38 = vpack.c.bf16 %v55_v34, %v55_v34  ;;  %697 = vmatprep.subr.bf16.mxu1 %v1238_v31  ;;  %v83_v41 = vpack.c.bf16 %v56_v36, %v56_v36  ;;  %v1264_v55 = vld [vmem:[#allocation2 + $0x70] ss:$8 sps:$4 sm:$0xff]   ;;  %v1268_v56 = vld [vmem:[#allocation2 + $0x84] ss:$8 sps:$4 sm:$0xff]   ;;  %v1216_v57 = vld [vmem:[#allocation2 + $0x1d4] ss:$8 sps:$4 sm:$0xff]   ;;  %v80_v36 = vpack.c.bf16 %v1435_v30, %v1435_v30 }
  0x23   :  { %v1218_v58 = vld [vmem:[#allocation2 + $0x1d0] ss:$8 sps:$4 sm:$0xff]   ;;  %v1270_v59 = vld [vmem:[#allocation2 + $0x80] ss:$8 sps:$4 sm:$0xff]   ;;  %v1274_v60 = vld [vmem:[#allocation2 + $0x94] ss:$8 sps:$4 sm:$0xff]  }
  0x24   :  { %723 = vmatprep.mubr.bf16.mxu1 %v81_v38  ;;  %764 = vmatprep.mubr.bf16.mxu0 %v83_v41  ;;  %v1222_v61 = vld [vmem:[#allocation2 + $0x1e4] ss:$8 sps:$4 sm:$0xff]   ;;  %v1224_v62 = vld [vmem:[#allocation2 + $0x1e0] ss:$8 sps:$4 sm:$0xff]   ;;  %v1276_v63 = vld [vmem:[#allocation2 + $0x90] ss:$8 sps:$4 sm:$0xff]  }
  0x25   :  { %741 = vmatpush1.bf16.msra.mxu0 %v1191_v9  ;;  %698 = vmatpush1.bf16.msra.mxu1 %v1240_v37  ;;  %v1280_v0 = vld [vmem:[#allocation2 + $0xa4] ss:$8 sps:$4 sm:$0xff]   ;;  %v1228_v1 = vld [vmem:[#allocation2 + $0x1f4] ss:$8 sps:$4 sm:$0xff]   ;;  %v1230_v2 = vld [vmem:[#allocation2 + $0x1f0] ss:$8 sps:$4 sm:$0xff]  }
  0x26   :  { %742 = vmatprep.subr.bf16.mxu0 %v1192_v10  ;;  %699 = vmatprep.subr.bf16.mxu1 %v1244_v39  ;;  %v1282_v3 = vld [vmem:[#allocation2 + $0xa0] ss:$8 sps:$4 sm:$0xff]   ;;  %v1286_v4 = vld [vmem:[#allocation2 + $0xb4] ss:$8 sps:$4 sm:$0xff]   ;;  %v1237_v5 = vld [vmem:[#allocation2 + $0x204] ss:$8 sps:$4 sm:$0xff]  }
  0x27   :  { %v1235_v6 = vld [vmem:[#allocation2 + $0x200] ss:$8 sps:$4 sm:$0xff]   ;;  %v1288_v8 = vld [vmem:[#allocation2 + $0xb0] ss:$8 sps:$4 sm:$0xff]   ;;  %v1292_v9 = vld [vmem:[#allocation2 + $0xc4] ss:$8 sps:$4 sm:$0xff]  }
  0x28   :  { %v1243_v10 = vld [vmem:[#allocation2 + $0x214] ss:$8 sps:$4 sm:$0xff]   ;;  %v37_v11 = vld [vmem:[%s1578_s0 + $0x8] sm:$0x3f]  ;;  %v1300_v18 = vld [vmem:[#allocation2 + $0xd0] ss:$8 sps:$4 sm:$0xff]  }
  0x29   :  { %743 = vmatpush1.bf16.msra.mxu0 %v1194_v14  ;;  %700 = vmatpush1.bf16.msra.mxu1 %v1246_v43  ;;  %v1294_v12 = vld [vmem:[#allocation2 + $0xc0] ss:$8 sps:$4 sm:$0xff]   ;;  %v1450_v13 = vrot.slane %v37_v11, %v1429_v25  ;;  %v1241_v14 = vld [vmem:[#allocation2 + $0x210] ss:$8 sps:$4 sm:$0xff]   ;;  %v1298_v15 = vld [vmem:[#allocation2 + $0xd4] ss:$8 sps:$4 sm:$0xff]   ;;  %v57_v37 = vcombine.high %v37_v11, %v37_v11 }
  0x2a   :  { %744 = vmatprep.subr.bf16.mxu0 %v1195_v17  ;;  %701 = vmatprep.subr.bf16.mxu1 %v1250_v44  ;;  %v1249_v16 = vld [vmem:[#allocation2 + $0x224] ss:$8 sps:$4 sm:$0xff]   ;;  %v1247_v21 = vld [vmem:[#allocation2 + $0x220] ss:$8 sps:$4 sm:$0xff]   ;;  %v1253_v26 = vld [vmem:[#allocation2 + $0x230] ss:$8 sps:$4 sm:$0xff]  }
  0x2b   :  { %v72_v17 = vcombine.high %v1450_v13, %v1450_v13  ;;  %v1306_v24 = vld [vmem:[#allocation2 + $0xe0] ss:$8 sps:$4 sm:$0xff]   ;;  %v1261_v28 = vld [vmem:[#allocation2 + $0x244] ss:$8 sps:$4 sm:$0xff]   ;;  %v1312_v29 = vld [vmem:[#allocation2 + $0xf0] ss:$8 sps:$4 sm:$0xff]  }
  0x2c   :  { %v1259_v31 = vld [vmem:[#allocation2 + $0x240] ss:$8 sps:$4 sm:$0xff]   ;;  %v1267_v33 = vld [vmem:[#allocation2 + $0x254] ss:$8 sps:$4 sm:$0xff]   ;;  %v1265_v39 = vld [vmem:[#allocation2 + $0x250] ss:$8 sps:$4 sm:$0xff]  }
  0x2d   :  { %745 = vmatpush1.bf16.msra.mxu0 %v1197_v22  ;;  %702 = vmatpush1.bf16.msra.mxu1 %v1252_v47  ;;  %v85_v20 = vpack.c.bf16 %v72_v17, %v72_v17  ;;  %v1304_v22 = vld [vmem:[#allocation2 + $0xe4] ss:$8 sps:$4 sm:$0xff]   ;;  %v1319_v38 = vld [vmem:[#allocation2 + $0x300] ss:$8 sps:$4 sm:$0xff]   ;;  %v1382_v43 = vmov 0   ;;  %v876_v47 = vld [vmem:[%s1581_s3 + $0x98] sm:$0xff] }
  0x2e   :  { %746 = vmatprep.subr.bf16.mxu0 %v1198_v23  ;;  %703 = vmatprep.subr.bf16.mxu1 %v1256_v48  ;;  %v1255_v23 = vld [vmem:[#allocation2 + $0x234] ss:$8 sps:$4 sm:$0xff]   ;;  %v873_v34 = vld [vmem:[%s1581_s3 + $0x80] sm:$0xff]  ;;  %s1383_s21 = smov [#allocation5]  }
  0x2f   :  { %v1273_v41 = vld [vmem:[#allocation2 + $0x264] ss:$8 sps:$4 sm:$0xff]   ;;  %v1271_v44 = vld [vmem:[#allocation2 + $0x260] ss:$8 sps:$4 sm:$0xff]   ;;  %s985_s22 = sshll.u32 %s1383_s21, 4  ;;  %s986_s22 = int_to_ptr.vmem [resolvable:$true] %s985_s22 }
  0x30   :  { %v857_v30 = vld [vmem:[%s1581_s3] sm:$0xff]  ;;  %p1357_p9 = scmp.lt.s32.totalorder %s986_s22, %s986_s22 }
  0x31   :  { %747 = vmatpush1.bf16.msra.mxu0 %v1200_v27  ;;  %704 = vmatpush1.bf16.msra.mxu1 %v1258_v51  ;;  %v1310_v27 = vld [vmem:[#allocation2 + $0xf4] ss:$8 sps:$4 sm:$0xff]   ;;  %v1309_v11 = vld [vmem:[#allocation2 + $0x2c4] ss:$8 sps:$4 sm:$0xff]   ;;  %v1316_v17 = vld [vmem:[#allocation2 + $0x2e0] ss:$8 sps:$4 sm:$0xff]  }
  0x32   :  { %748 = vmatprep.subr.bf16.mxu0 %v1201_v32  ;;  %705 = vmatprep.subr.bf16.mxu1 %v1262_v52  ;;  %v1321_v32 = vld [vmem:[#allocation2 + $0x304] ss:$8 sps:$4 sm:$0xff]   ;;  %v859_v52 = vld [vmem:[%s1581_s3 + $0x10] sm:$0xff] }
  0x35   :  { %749 = vmatpush1.bf16.msra.mxu0 %v1203_v35  ;;  %706 = vmatpush1.bf16.msra.mxu1 %v1264_v55  ;;  %v874_v35 = vld [vmem:[%s1581_s3 + $0x88] sm:$0xff]  ;;  %v877_v55 = vld [vmem:[%s1581_s3 + $0xa0] sm:$0xff] }
  0x36   :  { %750 = vmatprep.subr.bf16.mxu0 %v1204_v40  ;;  %707 = vmatprep.subr.bf16.mxu1 %v1268_v56  ;;  %v1129_v40 = vpack.c.bf16 %v874_v35, %v873_v34  ;;  %v878_v56 = vld [vmem:[%s1581_s3 + $0xa8] sm:$0xff]  ;;  %v885_v35 = vld [vmem:[%s1581_s3 + $0xe0] sm:$0xff] }
  0x39   :  { %751 = vmatpush1.bf16.msra.mxu0 %v1206_v42  ;;  %708 = vmatpush1.bf16.msra.mxu1 %v1270_v59  ;;  %v71_v42 = vrot.slane %v57_v37, %v1429_v25  ;;  %v875_v25 = vld [vmem:[%s1581_s3 + $0x90] sm:$0xff]  ;;  %v1137_v59 = vpack.c.bf16 %v878_v56, %v877_v55  ;;  %v193_v55 = vsub.s32 1, %v1426_v19 }
  0x3a   :  { %752 = vmatprep.subr.bf16.mxu0 %v1207_v45  ;;  %709 = vmatprep.subr.bf16.mxu1 %v1274_v60  ;;  %v858_v45 = vld [vmem:[%s1581_s3 + $0x8] sm:$0xff]  ;;  %v1133_v51 = vpack.c.bf16 %v876_v47, %v875_v25  ;;  %v861_v60 = vld [vmem:[%s1581_s3 + $0x20] sm:$0xff] }
  0x3b   :  { %v86_v48 = vpack.c.bf16 %v71_v42, %v71_v42  ;;  %v888_v42 = vld [vmem:[%s1581_s3 + $0xf8] sm:$0xff] }
  0x3d   :  { %753 = vmatpush1.bf16.msra.mxu0 %v1209_v46  ;;  %710 = vmatpush1.bf16.msra.mxu1 %v1276_v63  ;;  %v1279_v46 = vld [vmem:[#allocation2 + $0x274] ss:$8 sps:$4 sm:$0xff]  }
  0x3e   :  { %754 = vmatprep.subr.bf16.mxu0 %v1210_v49  ;;  %711 = vmatprep.subr.bf16.mxu1 %v1280_v0  ;;  %v1131_v49 = vpack.c.bf16 %v858_v45, %v857_v30  ;;  %v879_v63 = vld [vmem:[%s1581_s3 + $0xb0] sm:$0xff]  ;;  %v880_v0 = vld [vmem:[%s1581_s3 + $0xb8] sm:$0xff] }
  0x3f   :  { %v872_v30 = vld [vmem:[%s1581_s3 + $0x78] sm:$0xff] }
  0x41   :  { %755 = vmatpush1.bf16.msra.mxu0 %v1212_v50  ;;  %712 = vmatpush1.bf16.msra.mxu1 %v1282_v3  ;;  %v1277_v50 = vld [vmem:[#allocation2 + $0x270] ss:$8 sps:$4 sm:$0xff]   ;;  %v1141_v3 = vpack.c.bf16 %v880_v0, %v879_v63 }
  0x42   :  { %756 = vmatprep.subr.bf16.mxu0 %v1213_v53  ;;  %713 = vmatprep.subr.bf16.mxu1 %v1286_v4  ;;  %v860_v53 = vld [vmem:[%s1581_s3 + $0x18] sm:$0xff]  ;;  %v863_v4 = vld [vmem:[%s1581_s3 + $0x30] sm:$0xff] }
  0x45   :  { %757 = vmatpush1.bf16.msra.mxu0 %v1215_v54  ;;  %714 = vmatpush1.bf16.msra.mxu1 %v1288_v8  ;;  %v1285_v54 = vld [vmem:[#allocation2 + $0x284] ss:$8 sps:$4 sm:$0xff]   ;;  %v1295_v8 = vld [vmem:[#allocation2 + $0x2a0] ss:$8 sps:$4 sm:$0xff]  }
  0x46   :  { %758 = vmatprep.subr.bf16.mxu0 %v1216_v57  ;;  %715 = vmatprep.subr.bf16.mxu1 %v1292_v9  ;;  %v1135_v57 = vpack.c.bf16 %v860_v53, %v859_v52  ;;  %v1303_v9 = vld [vmem:[#allocation2 + $0x2b4] ss:$8 sps:$4 sm:$0xff]   ;;  %v189_v53 = vsub.s32 0, %v1426_v19  ;;  %v1093_v19 = vld [vmem:[%s1582_s4] ss:$0 sm:$0xff]  ;;  %s1352_s4 = scalar_lea.vmem %s986_s22, 32 }
  0x47   :  { %p1353_p8 = scmp.ne.s32.totalorder %s986_s22, %s1352_s4  ;;  %p1358_p10 = scmp.lt.s32.totalorder %s1352_s4, %s1352_s4 }
  0x49   :  { %759 = vmatpush1.bf16.msra.mxu0 %v1218_v58  ;;  %716 = vmatpush1.bf16.msra.mxu1 %v1294_v12  ;;  %v1283_v58 = vld [vmem:[#allocation2 + $0x280] ss:$8 sps:$4 sm:$0xff]   ;;  %p1359_p11 = por %p1358_p10, %p1357_p9 }
  0x4a   :  { %760 = vmatprep.subr.bf16.mxu0 %v1222_v61  ;;  %717 = vmatprep.subr.bf16.mxu1 %v1298_v15  ;;  %v862_v61 = vld [vmem:[%s1581_s3 + $0x28] sm:$0xff]  ;;  %v1313_v15 = vld [vmem:[#allocation2 + $0x2d0] ss:$8 sps:$4 sm:$0xff]  }
  0x4b   :  { %v1307_v12 = vld [vmem:[#allocation2 + $0x2c0] ss:$8 sps:$4 sm:$0xff]   ;;  %p1360_p12 = pnand %p1359_p11, %p1353_p8 }
  0x4d   :  { %761 = vmatpush1.bf16.msra.mxu0 %v1224_v62  ;;  %718 = vmatpush1.bf16.msra.mxu1 %v1300_v18  ;;  %v1291_v62 = vld [vmem:[#allocation2 + $0x294] ss:$8 sps:$4 sm:$0xff]  }
  0x4e   :  { %762 = vmatprep.subr.bf16.mxu0 %v1228_v1  ;;  %719 = vmatprep.subr.bf16.mxu1 %v1304_v22  ;;  %v1139_v1 = vpack.c.bf16 %v862_v61, %v861_v60  ;;  %v1324_v18 = vld [vmem:[#allocation2 + $0x2f4] ss:$8 sps:$4 sm:$0xff]   ;;  %v881_v22 = vld [vmem:[%s1581_s3 + $0xc0] sm:$0xff] }
  0x51   :  { %763 = vmatpush1.bf16.msra.mxu0 %v1230_v2  ;;  %720 = vmatpush1.bf16.msra.mxu1 %v1306_v24  ;;  %v1289_v2 = vld [vmem:[#allocation2 + $0x290] ss:$8 sps:$4 sm:$0xff]  }
  0x52   :  { %773 = vmatprep.subr.bf16.mxu0 %v1237_v5  ;;  %721 = vmatprep.subr.bf16.mxu1 %v1310_v27  ;;  %v864_v5 = vld [vmem:[%s1581_s3 + $0x38] sm:$0xff]  ;;  %v866_v27 = vld [vmem:[%s1581_s3 + $0x48] sm:$0xff] }
  0x54   :  { %765 = vmatmul.mubr.bf16.vlgmr.msra.gmra.mrb[0].mxu0 %v82_v7  ;;  %v1143_v7 = vpack.c.bf16 %v864_v5, %v863_v4 }
  0x55   :  { %774 = vmatpush1.bf16.msra.mxu0 %v1235_v6  ;;  %805 = vmatprep.mubr.bf16.mxu0 %v85_v20  ;;  %v1297_v6 = vld [vmem:[#allocation2 + $0x2a4] ss:$8 sps:$4 sm:$0xff]   ;;  %v1322_v20 = vld [vmem:[#allocation2 + $0x2f0] ss:$8 sps:$4 sm:$0xff]  }
  0x56   :  { %775 = vmatprep.subr.bf16.mxu0 %v1243_v10  ;;  %722 = vmatpush1.bf16.msra.mxu1 %v1312_v29  ;;  %v1301_v10 = vld [vmem:[#allocation2 + $0x2b0] ss:$8 sps:$4 sm:$0xff]  }
  0x57   :  { %814 = vmatprep.subr.bf16.mxu1 %v1321_v32  ;;  %v884_v29 = vld [vmem:[%s1581_s3 + $0xd8] sm:$0xff] }
  0x58   :  { %v868_v32 = vld [vmem:[%s1581_s3 + $0x58] sm:$0xff] }
  0x59   :  { %776 = vmatpush1.bf16.msra.mxu0 %v1241_v14  ;;  %724 = vmatmul.mubr.bf16.vlgmr.msra.gmra.mrb[0].mxu1 %v80_v36  ;;  %v1315_v14 = vld [vmem:[#allocation2 + $0x2d4] ss:$8 sps:$4 sm:$0xff]   ;;  %v886_v36 = vld [vmem:[%s1581_s3 + $0xe8] sm:$0xff] }
  0x5a   :  { %777 = vmatprep.subr.bf16.mxu0 %v1249_v16  ;;  %815 = vmatpush1.bf16.msra.mxu1 %v1319_v38  ;;  %v1318_v16 = vld [vmem:[#allocation2 + $0x2e4] ss:$8 sps:$4 sm:$0xff]   ;;  %v1153_v37 = vpack.c.bf16 %v886_v36, %v885_v35 }
  0x5b   :  { %846 = vmatprep.mubr.bf16.mxu1 %v1382_v43  ;;  %1130 = vmatprep.subr.bf16.mxu1 %v1129_v40  ;;  %v869_v38 = vld [vmem:[%s1581_s3 + $0x60] sm:$0xff] }
  0x5d   :  { %778 = vmatpush1.bf16.msra.mxu0 %v1247_v21  ;;  %v84_v21 = vpack.c.bf16 %v1450_v13, %v1450_v13  ;;  %v883_v13 = vld [vmem:[%s1581_s3 + $0xd0] sm:$0xff] }
  0x5e   :  { %779 = vmatprep.subr.bf16.mxu0 %v1255_v23  ;;  %v882_v23 = vld [vmem:[%s1581_s3 + $0xc8] sm:$0xff] }
  0x5f   :  { %v1145_v24 = vpack.c.bf16 %v882_v23, %v881_v22 }
  0x61   :  { %780 = vmatpush1.bf16.msra.mxu0 %v1253_v26  ;;  %1092 = vmatmul.mubr.msk.bf16.vlgmr.msra.gmra.mrb[4].mxu1 %vm687_vm0, %v86_v48  ;;  %v865_v26 = vld [vmem:[%s1581_s3 + $0x40] sm:$0xff] }
  0x62   :  { %781 = vmatprep.subr.bf16.mxu0 %v1261_v28  ;;  %1132 = vmatpush3.bf16.msra.mxu1 %v1131_v49  ;;  %v1147_v28 = vpack.c.bf16 %v866_v27, %v865_v26 }
  0x63   :  { %1134 = vmatprep.subr.bf16.mxu1 %v1133_v51 }
  0x65   :  { %782 = vmatpush1.bf16.msra.mxu0 %v1259_v31  ;;  %v867_v31 = vld [vmem:[%s1581_s3 + $0x50] sm:$0xff] }
  0x66   :  { %783 = vmatprep.subr.bf16.mxu0 %v1267_v33  ;;  %1136 = vmatpush3.bf16.msra.mxu1 %v1135_v57  ;;  %v1149_v33 = vpack.c.bf16 %v884_v29, %v883_v13  ;;  %v1151_v34 = vpack.c.bf16 %v868_v32, %v867_v31 }
  0x67   :  { %1138 = vmatprep.subr.bf16.mxu1 %v1137_v59 }
  0x69   :  { %784 = vmatpush1.bf16.msra.mxu0 %v1265_v39  ;;  %v870_v39 = vld [vmem:[%s1581_s3 + $0x68] sm:$0xff] }
  0x6a   :  { %785 = vmatprep.subr.bf16.mxu0 %v1273_v41  ;;  %1140 = vmatpush3.bf16.msra.mxu1 %v1139_v1  ;;  %v1155_v40 = vpack.c.bf16 %v870_v39, %v869_v38  ;;  %v887_v41 = vld [vmem:[%s1581_s3 + $0xf0] sm:$0xff] }
  0x6b   :  { %1142 = vmatprep.subr.bf16.mxu1 %v1141_v3  ;;  %v1157_v43 = vpack.c.bf16 %v888_v42, %v887_v41 }
  0x6d   :  { %786 = vmatpush1.bf16.msra.mxu0 %v1271_v44  ;;  %v871_v44 = vld [vmem:[%s1581_s3 + $0x70] sm:$0xff] }
  0x6e   :  { %787 = vmatprep.subr.bf16.mxu0 %v1279_v46  ;;  %1144 = vmatpush3.bf16.msra.mxu1 %v1143_v7  ;;  %v1159_v45 = vpack.c.bf16 %v872_v30, %v871_v44 }
  0x6f   :  { %1146 = vmatprep.subr.bf16.mxu1 %v1145_v24 }
  0x71   :  { %788 = vmatpush1.bf16.msra.mxu0 %v1277_v50 }
  0x72   :  { %789 = vmatprep.subr.bf16.mxu0 %v1285_v54  ;;  %1148 = vmatpush3.bf16.msra.mxu1 %v1147_v28  ;;  %v185_v54 = vld [vmem:[%s1580_s2] sm:$0x3] }
  0x73   :  { %1150 = vmatprep.subr.bf16.mxu1 %v1149_v33  ;;  %v190_v56 = vrot.slane %v185_v54, %v189_v53  ;;  %v194_v57 = vrot.slane %v185_v54, %v193_v55 }
  0x75   :  { %790 = vmatpush1.bf16.msra.mxu0 %v1283_v58 }
  0x76   :  { %791 = vmatprep.subr.bf16.mxu0 %v1291_v62  ;;  %1152 = vmatpush3.bf16.msra.mxu1 %v1151_v34 }
  0x77   :  { %1154 = vmatprep.subr.bf16.mxu1 %v1153_v37 }
  0x79   :  { %792 = vmatpush1.bf16.msra.mxu0 %v1289_v2 }
  0x7a   :  { %793 = vmatprep.subr.bf16.mxu0 %v1297_v6  ;;  %1156 = vmatpush3.bf16.msra.mxu1 %v1155_v40 }
  0x7b   :  { %1158 = vmatprep.subr.bf16.mxu1 %v1157_v43 }
  0x7d   :  { %794 = vmatpush1.bf16.msra.mxu0 %v1295_v8 }
  0x7e   :  { %795 = vmatprep.subr.bf16.mxu0 %v1303_v9  ;;  %1160 = vmatpush3.bf16.msra.mxu1 %v1159_v45 }
  0x81   :  { %796 = vmatpush1.bf16.msra.mxu0 %v1301_v10 }
  0x82   :  { %797 = vmatprep.subr.bf16.mxu0 %v1309_v11 }
  0x85   :  { %798 = vmatpush1.bf16.msra.mxu0 %v1307_v12 }
  0x86   :  { %799 = vmatprep.subr.bf16.mxu0 %v1315_v14 }
  0x89   :  { %800 = vmatpush1.bf16.msra.mxu0 %v1313_v15 }
  0x8a   :  { %801 = vmatprep.subr.bf16.mxu0 %v1318_v16 }
  0x8d   :  { %802 = vmatpush1.bf16.msra.mxu0 %v1316_v17 }
  0x8e   :  { %803 = vmatprep.subr.bf16.mxu0 %v1324_v18 }
  0x91   :  { %804 = vmatpush1.bf16.msra.mxu0 %v1322_v20 }
  0x94   :  { %806 = vmatmul.mubr.bf16.vlgmr.msra.gmra.mrb[0].mxu0 %v84_v21 }
 0x12c   :  { %v725_v46 = vpop.f32.mrb[0].mxu1 }
 0x12d   :  { %v727_v25 = vpop.f32.mrb[1].mxu1  ;;  %v726_v58 = vadd.f32 %v725_v46, %v190_v56 }
 0x12e   :  { %v729_v47 = vpop.f32.mrb[2].mxu1  ;;  %v728_v59 = vadd.f32 %v727_v25, %v194_v57 }
 0x12f   :  { %v730_v48 = vpop.f32.mrb[3].mxu1 }
 0x134   :  { %v848_v49 = vpop.f32.mrb[4].mxu1 }
 0x135   :  { %v850_v50 = vpop.f32.mrb[5].mxu1 }
 0x136   :  { %v852_v51 = vpop.f32.mrb[6].mxu1 }
 0x137   :  { %v853_v52 = vpop.f32.mrb[7].mxu1 }
 0x167   :  { %v807_v60 = vpop.f32.mrb[0].mxu0 }
 0x168   :  { %v1162_v61 = vadd.f32 %v807_v60, %v726_v58  ;;  %v809_v62 = vpop.f32.mrb[1].mxu0 }
 0x169   :  { %v1165_v63 = vadd.f32 %v809_v62, %v728_v59  ;;  %v811_v0 = vpop.f32.mrb[2].mxu0 }
 0x16a   :  { %v1163_v1 = vadd.f32 %v1162_v61, %v848_v49  ;;  %v812_v2 = vpop.f32.mrb[3].mxu0 }
 0x16b   :  { %v1166_v3 = vadd.f32 %v1165_v63, %v850_v50 }
 0x16c   :  { %v855_v5 = vmax.f32 %v1163_v1, 0.0 }
 0x16d   :  { %v856_v4 = vmax.f32 %v1166_v3, 0.0 }
 0x16f   :  { %960 = vmatprep.mubr.f32.mxu1 %v856_v4 }
 0x170   :  { %961 = vmatmul.mubr.f32.vlgmr.msra.gmra.mrb[8].mxu1 %v855_v5 }
 0x243   :  { %v1126_v6 = vpop.f32.mrb[8].mxu1 }
 0x244   :  { %v1127_v7 = vpop.f32.mrb[9].mxu1 }
 0x245   :  { %v1128_v8 = vadd.f32 %v1127_v7, %v1126_v6 }
 0x247   :  { %v963_v9 = vadd.f32 %v1128_v8, %v1093_v19 }
 0x249   :  { %v967_v10 = vsel %vm966_vm1, %v963_v9, -inf }
 0x24a   :  { %968 = vmax.xlane.f32.xlu0 %v967_v10 }
 0x2d7   :  { %v969_v11 = vpop.xlane.xlu0 %968 }
 0x2d8   :  { %v970_v12 = vsub.f32 %v963_v9, %v969_v11 }
 0x2da   :  { %v971_v14 = vmul.f32 1.442695, %v970_v12 }
 0x2dc   :  { %1326 = vpow2.f32 %v971_v14 }
 0x2e6   :  { %v1327_v15 = vpop.eup %1326 }
 0x2e7   :  { %v973_v16 = vsel %vm966_vm1, %v1327_v15, 0.0 }
 0x2e8   :  { %974 = vadd.xlane.f32.xlu0 %v973_v16 }
 0x375   :  { %v975_v17 = vpop.xlane.xlu0 %974 }
 0x376   :  { %1328 = vrcp.f32 %v975_v17 }
 0x380   :  { %v1329_v18 = vpop.eup %1328 }
 0x381   :  { %v977_v20 = vmul.f32 %v1329_v18, %v1327_v15 }
 0x383   :  { %978 = vst.msk [vmem:[#allocation5] sm:$0x3] %vm966_vm1, %v977_v20 }
 0x384   :  { %1363 = shalt.err (!%p1360_p12)
}
 0x385   :  { %s1364_s25 = scalar_lea.hbm %s1583_s5, 32 }
 0x386   :  { %p1365_p13 = scmp.ne.s32.totalorder %s1583_s5, %s1364_s25  ;;  %p1368_p0 = scmp.lt.u32.totalorder %s1364_s25, %s1583_s5 }
 0x388   :  { %p1370_p1 = pnand %p1368_p0, %p1365_p13 }
 0x38a   :  { %1373 = shalt.err (!%p1370_p1)
}
 0x38b   :  { %988 = dma.vmem_to_hbm [thread:$0]  %s986_s22, 32, %s1583_s5, [#allocation4]  }
 0x38c   :  { %1376 = dma.done.wait [#allocation4], 32  }
 0x38d   :  { %1377 = vsyncadd [#allocation4], 4294967264 }
 0x38e   :  { %992 = vsyncpa [#allocation3], 1 }
 0x38f   :  { %993 = vsyncpa [#allocation4], 1 }

</bundles_post_ra>
